<compile_context>
chip_gen: v7x
topology: tpu7x:2x2x1
jax: 0.10.0
libtpu: 0.0.40
codegen_flags: <defaults>
</compile_context>

<pallas_src>
import functools
import math

import jax
import jax.numpy as jnp
from jax.experimental import pallas as pl
from jax.experimental.pallas import tpu as pltpu


# ---------------------------------------------------------------------------
# Kernel bodies
# ---------------------------------------------------------------------------

def _softmax_sublane_kernel(x_ref, o_ref, *, beta):
    """Block (Bt, C, TILE_S): softmax over axis=1 (channels on the sublane axis)."""
    x = x_ref[...].astype(jnp.float32)
    if beta != 1.0:                       # static (trace-time) check; beta is a Python float
        x = x * jnp.float32(beta)
    m = jnp.max(x, axis=1, keepdims=True)           # sublane reduce (numerical stability)
    v = jnp.exp(x - m)                              # EUP exp (only per-element transcendental)
    s = jnp.sum(v, axis=1, keepdims=True)           # sublane reduce over channels
    inv = pl.reciprocal(s, approx=False)            # exact keeps rtol=1e-5; approx=True ok if tol allows
    o_ref[...] = (v * inv).astype(o_ref.dtype)      # VPU multiply, lane-dense store


def _softmax_lane_kernel(x_ref, o_ref, *, beta):
    """Block (TILE_R, columns): softmax over axis=-1 (columns on the lane axis, XLU reduce)."""
    x = x_ref[...].astype(jnp.float32)
    if beta != 1.0:
        x = x * jnp.float32(beta)
    m = jnp.max(x, axis=-1, keepdims=True)
    v = jnp.exp(x - m)
    s = jnp.sum(v, axis=-1, keepdims=True)
    inv = pl.reciprocal(s, approx=False)
    o_ref[...] = (v * inv).astype(o_ref.dtype)


# ---------------------------------------------------------------------------
# Tiling helpers
# ---------------------------------------------------------------------------

def _vmem_budget_bytes():
    """Generation-aware budget for 2-in + 2-out double-buffered blocks."""
    try:
        phys = int(pltpu.get_tpu_info().vmem_capacity_bytes)
    except Exception:          # interpret mode / non-TPU trace: conservative default
        return 12 << 20
    if phys <= (64 << 20):     # v7x-class: 64 MiB physical per TC, 2 TCs resident
        return 14 << 20
    return 20 << 20            # v5e / v6e: 128 MiB physical (scoped limit raised explicitly)


def _choose_tiles(B, C, S, itemsize, budget):
    """Pick (Bt, TILE_S): lane tile is a multiple of 128; per-step bytes are large
    enough to amortize the ~0.35us grid-step cost while 2-in + 2-out double-buffered
    blocks stay under `budget` bytes."""
    s128 = pl.cdiv(S, 128) * 128
    max_tile_s = max(128, (budget // (4 * C * itemsize)) // 128 * 128)
    max_tile_s = min(max_tile_s, 64 * 1024)            # keep DMA descriptors sane
    if s128 > max_tile_s:
        return 1, max_tile_s                            # lane axis tiled; ragged last tile masked
    # Whole spatial extent fits in one lane tile: fold batch into the block.
    tile_s = s128
    block_bytes = 4 * C * tile_s * itemsize             # per-sample across the 4 buffers
    target = 2 * 1024 * 1024                            # ~2 MiB per grid step
    bt = max(1, min(B, budget // max(block_bytes, 1),
                    pl.cdiv(target, max(block_bytes, 1))))
    # Keep >= 2 grid steps on the (parallel) batch axis when possible, so the grid
    # can be sharded across v7x's two TensorCores.
    if B >= 2 and pl.cdiv(B, bt) < 2:
        bt = pl.cdiv(B, 2)
    return bt, tile_s


# ---------------------------------------------------------------------------
# pallas_call wrappers
# ---------------------------------------------------------------------------

def _softmax_dim1_pallas(x, beta):
    """x: (B, C, S) -> softmax over axis=1, computed in (Bt, C, TILE_S) blocks."""
    B, C, S = x.shape
    itemsize = jnp.dtype(x.dtype).itemsize
    budget = _vmem_budget_bytes()
    bt, tile_s = _choose_tiles(B, C, S, itemsize, budget)
    grid = (pl.cdiv(B, bt), pl.cdiv(S, tile_s))          # ragged final tiles masked by Pallas

    kernel = functools.partial(_softmax_sublane_kernel, beta=float(beta))
    cost = pl.CostEstimate(
        flops=4 * B * C * S,                              # max + sub + sum + mul
        transcendentals=B * C * S + B * S,                # exp per element + recip per column
        bytes_accessed=2 * B * C * S * itemsize,          # one read + one write
    )
    return pl.pallas_call(
        kernel,
        out_shape=jax.ShapeDtypeStruct((B, C, S), x.dtype),
        grid_spec=pltpu.PrefetchScalarGridSpec(
            num_scalar_prefetch=0,
            grid=grid,
            in_specs=[pl.BlockSpec((bt, C, tile_s), lambda b, s: (b, 0, s))],
            out_specs=pl.BlockSpec((bt, C, tile_s), lambda b, s: (b, 0, s)),
        ),
        compiler_params=pltpu.CompilerParams(
            dimension_semantics=("parallel", "parallel"),
            vmem_limit_bytes=int(min(budget + (8 << 20), 32 << 20)),
        ),
        cost_estimate=cost,
    )(x)


def _softmax_lane_pallas(x, beta):
    """x: (R, Cc) -> softmax over axis=-1; columns stay on the lane axis (no transposes)."""
    R, Cc = x.shape
    itemsize = jnp.dtype(x.dtype).itemsize
    budget = _vmem_budget_bytes()
    row_bytes = 4 * Cc * itemsize                         # one row across the 4 buffers
    max_tile_r = max(8, (budget // max(row_bytes, 1)) // 8 * 8)
    tile_r = min(max_tile_r, pl.cdiv(R, 8) * 8)
    if tile_r >= R:
        tile_r = R                                        # single full-extent block on rows
    grid = (pl.cdiv(R, tile_r),)

    kernel = functools.partial(_softmax_lane_kernel, beta=float(beta))
    cost = pl.CostEstimate(
        flops=4 * R * Cc,
        transcendentals=R * Cc + R,
        bytes_accessed=2 * R * Cc * itemsize,
    )
    return pl.pallas_call(
        kernel,
        out_shape=jax.ShapeDtypeStruct((R, Cc), x.dtype),
        grid_spec=pltpu.PrefetchScalarGridSpec(
            num_scalar_prefetch=0,
            grid=grid,
            in_specs=[pl.BlockSpec((tile_r, Cc), lambda r: (r, 0))],
            out_specs=pl.BlockSpec((tile_r, Cc), lambda r: (r, 0)),
        ),
        compiler_params=pltpu.CompilerParams(
            dimension_semantics=("parallel",),
            vmem_limit_bytes=int(min(budget + (8 << 20), 32 << 20)),
        ),
        cost_estimate=cost,
    )(x)


# ---------------------------------------------------------------------------
# Public API (matches the PyTorch module forward semantics)
# ---------------------------------------------------------------------------

_LANE_PATH_MIN_ELEMS = 128 * 1024   # above this, 2-D inputs avoid wrapper transposes


def softmax_dim1(x, beta=1.0):
    """Softmax over dim=1 of x (rank >= 2), matching torch semantics."""
    if x.ndim == 2:
        R, Cc = x.shape
        if R * Cc >= _LANE_PATH_MIN_ELEMS:
            # Large matrix: reduce over the lane axis in-kernel; no HBM transposes.
            return _softmax_lane_pallas(x, beta)
        # Tiny matrices (e.g. the beam-matching parameter): transpose cost negligible.
        xt = jnp.transpose(x)[None]                      # (1, columns, rows)
        out = _softmax_dim1_pallas(xt, beta)
        return jnp.transpose(out[0])
    # (B, C, *spatial): flatten spatial onto the lane axis.
    B, C = x.shape[0], x.shape[1]
    S = math.prod(x.shape[2:]) if x.ndim > 2 else 1
    out = _softmax_dim1_pallas(x.reshape(B, C, S), beta)
    return out.reshape(x.shape)


def soft_argmax(x, beta=1.0):
    """SoftArgmax.forward: exp(beta*x) / sum(exp(beta*x), dim=1, keepdims=True)."""
    return softmax_dim1(x, beta=beta)


def beam_matching_softmax_matrix(matching_matrix, mode="softmax", beta=1.0):
    """BeamMatchingSoftmaxMatrix.forward on the (rows, columns) parameter."""
    if mode == "softmax":
        return softmax_dim1(matching_matrix, beta=1.0)
    elif mode == "softargmax":
        return softmax_dim1(matching_matrix, beta=beta)
    else:
        raise ValueError("Inserted mode not valid.")


if __name__ == "__main__":
    key = jax.random.PRNGKey(0)
    k1, k2, k3 = jax.random.split(key, 3)

    # 1) SoftArgmax on a 4-D NCHW activation (channel softmax), beta != 1.
    B, C, H, W = 2, 4, 16, 16
    x = jax.random.normal(k1, (B, C, H, W), dtype=jnp.float32)
    beta = 2.0
    out = jax.block_until_ready(soft_argmax(x, beta=beta))
    v = jnp.exp(beta * x)
    ref = v / jnp.sum(v, axis=1, keepdims=True)
    assert out.shape == x.shape and out.dtype == x.dtype
    assert jnp.allclose(out, ref, rtol=1e-5, atol=1e-6)

    # 2) BeamMatchingSoftmaxMatrix.forward on its (rows, columns) parameter, both modes.
    rows, columns = 8, 16
    m = 0.1 * jax.random.normal(k2, (rows, columns), dtype=jnp.float32)

    out_sm = jax.block_until_ready(beam_matching_softmax_matrix(m, mode="softmax"))
    ref_sm = jax.nn.softmax(m, axis=1)
    assert out_sm.shape == (rows, columns)
    assert jnp.allclose(out_sm, ref_sm, rtol=1e-5, atol=1e-6)

    out_sam = jax.block_until_ready(
        beam_matching_softmax_matrix(m, mode="softargmax", beta=1.0)
    )
    vm = jnp.exp(m)
    ref_sam = vm / jnp.sum(vm, axis=1, keepdims=True)
    assert jnp.allclose(out_sam, ref_sam, rtol=1e-5, atol=1e-6)

    # 3) Large 2-D matrix exercises the lane-axis-reduction path (no wrapper transposes).
    big = jax.random.normal(k3, (512, 256), dtype=jnp.float32)
    out_big = jax.block_until_ready(softmax_dim1(big))
    assert jnp.allclose(out_big, jax.nn.softmax(big, axis=1), rtol=1e-5, atol=1e-6)

    # 4) Ragged (non-128-multiple) spatial extent: H*W = 196 -> masked final lane tile.
    xr = jax.random.normal(k1, (2, 4, 14, 14), dtype=jnp.float32)
    out_r = jax.block_until_ready(soft_argmax(xr, beta=1.0))
    assert jnp.allclose(out_r, jax.nn.softmax(xr, axis=1), rtol=1e-5, atol=1e-6)

    print("KERNEL_OK")
</pallas_src>

<mosaic_0001>
module attributes {stable_mosaic.version = 11 : i64} {
  func.func @_softmax_sublane_kernel(%arg0: i32, %arg1: i32, %arg2: memref<1x4x256xf32, #tpu.memory_space<vmem>>, %arg3: memref<1x4x256xf32, #tpu.memory_space<vmem>>) attributes {dimension_semantics = [#tpu.dimension_semantics<parallel>, #tpu.dimension_semantics<parallel>], iteration_bounds = array<i64: 2, 1>, scalar_prefetch = 0 : i64, scratch_operands = 0 : i64, tpu.core_type = #tpu.core_type<tc>, window_params = [{transform_indices = @transform_0, window_bounds = array<i64: 1, 4, 256>}, {transform_indices = @transform_1, window_bounds = array<i64: 1, 4, 256>}]} {
    %c0 = arith.constant 0 : index
    %c0_0 = arith.constant 0 : index
    %c0_1 = arith.constant 0 : index
    %0 = vector.load %arg2[%c0, %c0_0, %c0_1] : memref<1x4x256xf32, #tpu.memory_space<vmem>>, vector<1x4x256xf32>
    %cst = arith.constant 2.000000e+00 : f32
    %1 = vector.broadcast %cst : f32 to vector<1x4x256xf32>
    %2 = arith.mulf %0, %1 : vector<1x4x256xf32>
    %cst_2 = arith.constant dense<0xFF800000> : vector<1x256xf32>
    %3 = vector.multi_reduction <maximumf>, %2, %cst_2 [1] : vector<1x4x256xf32> to vector<1x256xf32>
    %4 = vector.shape_cast %3 : vector<1x256xf32> to vector<1x1x256xf32>
    %5 = vector.broadcast %4 : vector<1x1x256xf32> to vector<1x4x256xf32>
    %6 = arith.subf %2, %5 : vector<1x4x256xf32>
    %7 = math.exp %6 : vector<1x4x256xf32>
    %cst_3 = arith.constant dense<0.000000e+00> : vector<1x256xf32>
    %8 = vector.multi_reduction <add>, %7, %cst_3 [1] : vector<1x4x256xf32> to vector<1x256xf32>
    %9 = vector.shape_cast %8 : vector<1x256xf32> to vector<1x1x256xf32>
    %10 = tpu.reciprocal %9 : vector<1x1x256xf32> -> vector<1x1x256xf32>
    %11 = vector.broadcast %10 : vector<1x1x256xf32> to vector<1x4x256xf32>
    %12 = arith.mulf %7, %11 : vector<1x4x256xf32>
    %c0_4 = arith.constant 0 : index
    %c0_5 = arith.constant 0 : index
    %c0_6 = arith.constant 0 : index
    %13 = vector.load %arg3[%c0_4, %c0_5, %c0_6] : memref<1x4x256xf32, #tpu.memory_space<vmem>>, vector<1x4x256xf32>
    tpu.vector_store %arg3[%c0_4, %c0_5, %c0_6], %12 {strides = array<i32>} : memref<1x4x256xf32, #tpu.memory_space<vmem>>, vector<1x4x256xf32>,
    return
  }
  func.func @transform_0(%arg0: i32, %arg1: i32) -> (i32, i32, i32) {
    %c0_i32 = arith.constant 0 : i32
    %c0_i32_0 = arith.constant 0 : i32
    return %arg0, %c0_i32, %arg1 : i32, i32, i32
  }
  func.func @transform_1(%arg0: i32, %arg1: i32) -> (i32, i32, i32) {
    %c0_i32 = arith.constant 0 : i32
    %c0_i32_0 = arith.constant 0 : i32
    return %arg0, %c0_i32, %arg1 : i32, i32, i32
  }
}

</mosaic_0001>

<bundles_post_ra>
// kernel: tpu_custom_call.1
= control target key start
LH: loop header
LB: loop body
LE: loop exit
PB: predicated region body
PF: predicated region fallthrough
CT: control target
= control target key end

     0   :  { %6 = vsyncpa [#allocation3], 0  ;;  %s697_s0 = inlined_call_operand.hbm [shape: f32[2,4,256], index: 0, kind: input, shape index: {}]   ;;  %s698_s1 = inlined_call_operand.hbm [shape: f32[2,4,256], index: 1, kind: output, shape index: {}]  }
   0x1   :  { %8 = vsyncpa [#allocation3 + $0x1], 0 }
   0x2   :  { %9 = vsyncpa [#allocation4], 0 }
   0x3   :  { %11 = vsyncpa [#allocation4 + $0x1], 0  ;;  %s517_s6 = smov 0   ;;  %s519_s7 = smov 0  }
   0x4   :  { %s521_s8 = smov 0   ;;  %s523_s9 = smov 0  }
   0x5   :  { %s525_s10 = smov 0   ;;  %s527_s11 = smov 0  }
   0x6 LB: > { %s306_s12 = sadd.s32 4294967295, %s503_s11   ;;  %s307_s13 = sadd.s32 4294967294, %s503_s11   ;;  %s503_s11 = sphi %s527_s11, %s17_s11   ;;  %s499_s10 = sphi %s525_s10, %s714_s10   ;;  %s495_s9 = sphi %s523_s9, %s713_s9   ;;  %s491_s8 = sphi %s521_s8, %s712_s8   ;;  %s487_s7 = sphi %s519_s7, %s711_s7   ;;  %s483_s6 = sphi %s517_s6, %s710_s6  }
   0x7   : > { %s29_s14 = sadd.s32 1, %s499_s10  ;;  %s38_s15 = sadd.s32 1, %s491_s8 }
   0x8   : > { %p31_p0 = scmp.ge.s32.totalorder %s29_s14, 2  ;;  %p45_p1 = scmp.ne.s32.totalorder %s491_s8, %s487_s7 }
   0x9   : > { %p46_p2 = scmp.eq.s32.totalorder %s503_s11, 0  ;;  %p51_p3 = scmp.ne.s32.totalorder %s487_s7, %s483_s6 }
   0xa   : > { %s716_s14 = smov (%p31_p0, %s29_s14), 0  ;;  %p52_p5 = scmp.eq.s32.totalorder %s306_s12, 0 }
   0xb   : > { %p558_p4 = por %p46_p2, %p45_p1  ;;  %s33_s17 = ssub.s32 %s499_s10, %s716_s14 }
   0xc   : > { %p77_p6 = scmp.eq.s32.totalorder %s306_s12, 1  ;;  %p36_p7 = scmp.eq.s32.totalorder %s33_s17, 0 }
   0xd   : > { %p564_p8 = por %p52_p5, %p51_p3  ;;  %p83_p10 = scmp.eq.s32.totalorder %s307_s13, 1 }
   0xe   : > { %p568_p9 = por %p77_p6, %p45_p1  ;;  %p335_p13 = scmp.lt.s32.totalorder %s503_s11, 2 }
   0xf   : > { %s573_s20 = scalar_select %p36_p7, %s491_s8, %s38_s15  }
  0x10   : > { %s702_s19 = scalar_select %p568_p9, 1, 0 }
  0x11   : > { %p575_p11 = por %p83_p10, %p51_p3  ;;  %s103_s22 = sand.u32 1, %s491_s8  }
  0x12   : > { %s310_s23 = sshll.u32 %s103_s22, 3  ;;  %s321_s24 = sshll.u32 %s499_s10, 7 }
  0x13   : > { %s703_s21 = scalar_select %p575_p11, 1, 0 }
  0x14   : > { %s586_s27 = scalar_lea.hbm %s697_s0, %s321_s24  ;;  %s107_s28 = scalar_lea.vmem [#allocation2], %s310_s23 }
  0x15   : > { %s117_s29 = sshll.u32 %s107_s28, 4  ;;  %p592_p0 = pnand %p335_p13, %p558_p4  ;;  %s588_s29 = int_to_ptr.vmem [resolvable:$true] %s117_s29 }
  0x16   : > { %s104_s2 = scalar_lea.sflag [#allocation3], %s103_s22  ;;  %s391_s3 = scalar_lea.hbm %s586_s27, 128 }
  0x17   : > { %p392_p3 = scmp.ne.s32.totalorder %s586_s27, %s391_s3  ;;  %p393_p5 = pneg %p592_p0 }
  0x18   : > { %s396_s12 = scalar_lea.hbm %s697_s0, 256  ;;  %p397_p4 = scmp.lt.u32.totalorder %s586_s27, %s697_s0 }
  0x19   : > { %p394_p6 = pnand %p393_p5, %p392_p3  ;;  %p398_p10 = scmp.lt.u32.totalorder %s396_s12, %s391_s3 }
  0x1a   : > { %p400_p12 = scmp.lt.u32.totalorder %s391_s3, %s586_s27 }
  0x1b   : > { %p395_p7 = pneg %p394_p6  ;;  %p399_p13 = por %p398_p10, %p397_p4 }
  0x1d   : > { %p401_p1 = por %p400_p12, %p399_p13 }
  0x1f   : > { %p402_p2 = pnand %p401_p1, %p395_p7 }
  0x21   : > { %405 = shalt.err (!%p402_p2)
}
  0x22   : > { %s406_s16 = scalar_lea.vmem %s588_s29, 128  ;;  %s505_s17 = smov [#allocation2]  }
  0x23   : > { %p407_p3 = scmp.ne.s32.totalorder %s588_s29, %s406_s16  ;;  %s411_s22 = sshll.u32 %s505_s17, 4  ;;  %s412_s22 = int_to_ptr.vmem [resolvable:$false] %s411_s22 }
  0x24   : > { %s413_s23 = scalar_lea.vmem %s412_s22, 256  ;;  %p414_p9 = scmp.lt.s32.totalorder %s588_s29, %s412_s22 }
  0x25   : > { %p409_p6 = pnand %p407_p3, %p393_p5  ;;  %p415_p4 = scmp.lt.s32.totalorder %s413_s23, %s406_s16 }
  0x27   : > { %p410_p11 = pneg %p409_p6  ;;  %p416_p10 = por %p415_p4, %p414_p9 }
  0x29   : > { %p417_p12 = pnand %p416_p10, %p410_p11 }
  0x2b   : > { %420 = shalt.err (!%p417_p12)
}
  0x2c   : > { %330 = dma.hbm_to_vmem [thread:$0]  (!%p592_p0), %s586_s27, 128, %s588_s29, %s104_s2  }
  0x2d   : > { %p705_p1 = scmp.lt.s32.totalorder %s503_s11, 3  ;;  %p706_p2 = scmp.ge.s32.totalorder %s503_s11, 1 }
  0x2f   : > { %p123_p5 = pnand %p706_p2, %p705_p1 }
  0x30   : > { %s628_s24 = sand.u32 (!%p123_p5), 1, %s487_s7  }
  0x31   : > { %126 = sbr.rel (%p123_p5) target bundleno = 136 (0x88), region = 24  ;;  %s314_s25 = sshll.u32 (!%p123_p5), %s628_s24, 3 }
  0x32   : > { %s129_s26 = scalar_lea.sflag (!%p123_p5), [#allocation3], %s628_s24  ;;  %s132_s28 = scalar_lea.vmem (!%p123_p5), [#allocation2], %s314_s25 }
  0x38   : > { %474 = dma.done.wait (%p564_p8), %s129_s26, 128  }
  0x39   : > { %476 = vsyncadd (%p564_p8), %s129_s26, 4294967168  ;;  %v153_v0 = vld [vmem:[%s132_s28] sm:$0xff]  ;;  %vm158_vm0 = vcmask 1043456   ;;  %s150_s18 = scalar_lea.vmem [#allocation5], %s314_s25  ;;  %s322_s29 = sshll.u32 %s495_s9, 7 }
  0x3a   : > { %v154_v1 = vmul.f32 2.0, %v153_v0  ;;  %s222_s27 = sshll.u32 %s150_s18, 4  ;;  %s650_s3 = scalar_lea.hbm %s698_s1, %s322_s29  ;;  %s645_s27 = int_to_ptr.vmem [resolvable:$true] %s222_s27 }
  0x3b   : > { %s206_s4 = scalar_lea.sflag [#allocation4], %s628_s24  ;;  %s421_s5 = scalar_lea.vmem %s645_s27, 128 }
  0x3c   : > { %v156_v2 = vcombine.high %v154_v1, %v154_v1  ;;  %v159_v3 = vsel %vm158_vm0, %v154_v1, -inf  ;;  %p422_p8 = scmp.ne.s32.totalorder %s645_s27, %s421_s5  ;;  %p707_p9 = scmp.ne.s32.totalorder %s702_s19, 0 }
  0x3d   : > { %v160_v4 = vrot.slane %v159_v3, 4  ;;  %s506_s9 = smov [#allocation5]  }
  0x3e   : > { %v166_v5 = vsel %vm158_vm0, %v156_v2, -inf  ;;  %p423_p11 = pnand %p422_p8, %p707_p9  ;;  %s425_s12 = sshll.u32 %s506_s9, 4  ;;  %s426_s12 = int_to_ptr.vmem [resolvable:$false] %s425_s12 }
  0x3f   : > { %v161_v6 = vmax.f32 %v159_v3, %v160_v4  ;;  %v167_v7 = vrot.slane %v166_v5, 4  ;;  %s427_s13 = scalar_lea.vmem %s426_s12, 256  ;;  %p428_p7 = scmp.lt.s32.totalorder %s645_s27, %s426_s12 }
  0x40   : > { %p424_p0 = pneg %p423_p11  ;;  %p429_p13 = scmp.lt.s32.totalorder %s427_s13, %s421_s5 }
  0x41   : > { %v162_v8 = vrot.slane %v161_v6, 2  ;;  %v168_v9 = vmax.f32 %v166_v5, %v167_v7 }
  0x42   : > { %p430_p3 = por %p429_p13, %p428_p7 }
  0x43   : > { %v163_v10 = vmax.f32 %v161_v6, %v162_v8  ;;  %v169_v11 = vrot.slane %v168_v9, 2 }
  0x44   : > { %p431_p6 = pnand %p430_p3, %p424_p0 }
  0x45   : > { %v164_v12 = vrot.slane %v163_v10, 1  ;;  %v170_v13 = vmax.f32 %v168_v9, %v169_v11 }
  0x47   : > { %v165_v14 = vmax.f32 %v163_v10, %v164_v12  ;;  %v171_v15 = vrot.slane %v170_v13, 1 }
  0x49   : > { %v172_v16 = vmax.f32 %v170_v13, %v171_v15 }
  0x4b   : > { %v175_v17 = vcombine.low %v165_v14, %v172_v16 }
  0x4d   : > { %v177_v18 = vsub.f32 %v154_v1, %v175_v17 }
  0x4f   : > { %v178_v19 = vmul.f32 1.442695, %v177_v18 }
  0x51   : > { %385 = vpow2.f32 %v178_v19 }
  0x5b   : > { %v386_v20 = vpop.eup %385 }
  0x5c   : > { %v181_v21 = vcombine.high %v386_v20, %v386_v20  ;;  %v183_v22 = vsel %vm158_vm0, %v386_v20, 0.0 }
  0x5d   : > { %v184_v23 = vrot.slane %v183_v22, 4 }
  0x5e   : > { %v190_v24 = vsel %vm158_vm0, %v181_v21, 0.0 }
  0x5f   : > { %v185_v25 = vadd.f32 %v184_v23, %v183_v22  ;;  %v191_v26 = vrot.slane %v190_v24, 4 }
  0x61   : > { %v186_v27 = vrot.slane %v185_v25, 2  ;;  %v192_v28 = vadd.f32 %v191_v26, %v190_v24 }
  0x63   : > { %v187_v29 = vadd.f32 %v186_v27, %v185_v25  ;;  %v193_v30 = vrot.slane %v192_v28, 2 }
  0x65   : > { %v188_v31 = vrot.slane %v187_v29, 1  ;;  %v194_v32 = vadd.f32 %v193_v30, %v192_v28 }
  0x67   : > { %v189_v33 = vadd.f32 %v188_v31, %v187_v29  ;;  %v195_v34 = vrot.slane %v194_v32, 1 }
  0x69   : > { %v196_v35 = vadd.f32 %v195_v34, %v194_v32  ;;  %387 = vrcp.f32 %v189_v33 }
  0x6b   : > { %389 = vrcp.f32 %v196_v35 }
  0x73   : > { %v388_v36 = vpop.eup %387 }
  0x75   : > { %v390_v37 = vpop.eup %389 }
  0x76   : > { %v201_v38 = vcombine.low %v388_v36, %v390_v37 }
  0x78   : > { %v203_v39 = vmul.f32 %v386_v20, %v201_v38 }
  0x7a   : > { %204 = vst [vmem:[%s150_s18] sm:$0xff] %v203_v39 }
  0x7b   : > { %434 = shalt.err (!%p431_p6)
}
  0x7c   : > { %s435_s15 = scalar_lea.hbm %s650_s3, 128  ;;  %s439_s22 = scalar_lea.hbm %s698_s1, 256 }
  0x7d   : > { %p436_p4 = scmp.ne.s32.totalorder %s650_s3, %s435_s15  ;;  %p440_p1 = scmp.lt.u32.totalorder %s650_s3, %s698_s1 }
  0x7e   : > { %p441_p2 = scmp.lt.u32.totalorder %s439_s22, %s435_s15  ;;  %p443_p8 = scmp.lt.u32.totalorder %s435_s15, %s650_s3 }
  0x7f   : > { %p437_p10 = pnand %p436_p4, %p707_p9 }
  0x80   : > { %p442_p5 = por %p441_p2, %p440_p1 }
  0x81   : > { %p438_p12 = pneg %p437_p10 }
  0x82   : > { %p444_p11 = por %p443_p8, %p442_p5 }
  0x84   : > { %p445_p0 = pnand %p444_p11, %p438_p12 }
  0x86   : > { %448 = shalt.err (!%p445_p0)
}
  0x87   : > { %325 = dma.vmem_to_hbm [thread:$0]  (%p707_p9), %s645_s27, 128, %s650_s3, %s206_s4  }
  0x88 PF: > { %s234_s25 = sand.u32 1, %s483_s6   ;;  %p708_p7 = scmp.ne.s32.totalorder %s703_s21, 0 }
  0x89   : > { %p709_p13 = scmp.ge.s32.totalorder %s503_s11, 2  ;;  %s235_s26 = scalar_lea.sflag [#allocation4], %s234_s25 }
  0x8b   : > { %p332_p3 = pnand %p709_p13, %p708_p7 }
  0x8d   : > { %478 = dma.done.wait (!%p332_p3), %s235_s26, 128  }
  0x8e   : > { %480 = vsyncadd (!%p332_p3), %s235_s26, 4294967168  ;;  %s17_s11 = sadd.s32 1, %s503_s11   ;;  %s710_s6 = smov %s487_s7 }
  0x8f   : > { %p14_p6 = scmp.ge.s32.totalorder %s17_s11, 4   ;;  %s711_s7 = smov %s491_s8 }
  0x90   : > { %s712_s8 = smov %s573_s20  ;;  %s713_s9 = smov %s499_s10 }
  0x91   : > { %s714_s10 = smov %s716_s14  ;;  %16 = sbr.rel (!%p14_p6) target bundleno = 6 (0x6), region = 69 }
  0x98   :  { %240 = vsyncpa [#allocation3], 1 }
  0x99   :  { %242 = vsyncpa [#allocation3 + $0x1], 1 }
  0x9a   :  { %243 = vsyncpa [#allocation4], 1 }
  0x9b   :  { %245 = vsyncpa [#allocation4 + $0x1], 1 }

</bundles_post_ra>
